<compile_context>
chip_gen: v7x
topology: tpu7x:2x2x1
jax: 0.10.0
libtpu: 0.0.40
codegen_flags: <defaults>
</compile_context>

<pallas_src>
import functools

import jax
import jax.numpy as jnp
from jax.experimental import pallas as pl
from jax.experimental.pallas import tpu as pltpu

_LANE = 128      # lane width (last dim) for f32 vregs
_SUBLANE = 8     # sublane width (second-to-last dim) for f32 vregs


def _round_up(n, m):
    return ((n + m - 1) // m) * m


def _mlp_kernel(x_ref, w1_ref, b1_ref, w2_ref, b2_ref, o_ref):
    # fc1: (TB, In) @ (In, Hp) + (1, Hp), f32 accumulation on the MXU.
    h = jnp.dot(x_ref[...], w1_ref[...], preferred_element_type=jnp.float32)
    # Bias + ReLU in f32 on the VPU.
    h = jnp.maximum(h + b1_ref[...], 0.0)
    # fc2: keep h in f32 (no activation downcast) -> (TB, Op).
    out = jnp.dot(h, w2_ref[...], preferred_element_type=jnp.float32)
    out = out + b2_ref[...]
    o_ref[...] = out.astype(o_ref.dtype)


def prepare_params(w1, b1, w2, b2, param_dtype=jnp.float32):
    """One-time parameter prep, hoisted out of the per-call hot path.

    - Transposes PyTorch (out_features, in_features) weights to (in, out)
      row-major for the MXU.
    - Zero-pads hidden and output feature dims to multiples of 128 so every
      matmul operand / output store is lane-dense.  Padded W2 rows and b2
      lanes are zero, so padded lanes never contaminate real outputs.
    - `param_dtype=jnp.bfloat16` is a valid option on v6e/v7x (f32 MXU
      accumulation is kept inside the kernel); f32 is the portable default.
    """
    hidden, in_size = w1.shape
    out_size = w2.shape[0]
    h_pad = _round_up(hidden, _LANE)
    o_pad = _round_up(out_size, _LANE)

    w1_t = jnp.zeros((in_size, h_pad), param_dtype).at[:, :hidden].set(
        w1.T.astype(param_dtype))
    b1_p = jnp.zeros((1, h_pad), jnp.float32).at[:, :hidden].set(
        b1.astype(jnp.float32))
    w2_t = jnp.zeros((h_pad, o_pad), param_dtype).at[:hidden, :out_size].set(
        w2.T.astype(param_dtype))
    b2_p = jnp.zeros((1, o_pad), jnp.float32).at[:, :out_size].set(
        b2.astype(jnp.float32))
    return (w1_t, b1_p, w2_t, b2_p), out_size


@functools.partial(jax.jit, static_argnames=("out_size", "block_b"))
def simple_nn_forward(x, params, *, out_size, block_b=128):
    """Fused MLP forward on pre-prepared (transposed + lane-padded) params.

    x: (B, input_size) float32.  Returns (B, out_size) in x.dtype.
    block_b: batch tile (rows per grid step).  128 keeps the VMEM footprint
    tiny even under v7x's 64 MiB budget; raise toward 512-2048 for large
    input/hidden sizes on v5e/v6e if the x DMA becomes exposed.
    """
    w1_t, b1_p, w2_t, b2_p = params
    B, in_size = x.shape
    h_pad = w1_t.shape[1]
    o_pad = w2_t.shape[1]

    # Batch tile: multiple of the f32 sublane (8), no larger than needed.
    tb = min(block_b, _round_up(B, _SUBLANE))
    b_pad = _round_up(B, tb)
    if b_pad != B:
        x = jnp.zeros((b_pad, in_size), x.dtype).at[:B].set(x)

    grid = (b_pad // tb,)

    flops = 2 * b_pad * (in_size * h_pad + h_pad * o_pad)
    bytes_accessed = (
        x.size * x.dtype.itemsize
        + w1_t.size * w1_t.dtype.itemsize
        + w2_t.size * w2_t.dtype.itemsize
        + (b1_p.size + b2_p.size) * 4
        + b_pad * o_pad * x.dtype.itemsize)

    out_padded = pl.pallas_call(
        _mlp_kernel,
        out_shape=jax.ShapeDtypeStruct((b_pad, o_pad), x.dtype),
        grid_spec=pltpu.PrefetchScalarGridSpec(
            num_scalar_prefetch=0,
            grid=grid,
            in_specs=[
                # x: streamed per batch tile (double-buffered, pipelined DMA).
                pl.BlockSpec((tb, in_size), lambda i: (i, 0)),
                # Weights / biases: resident in VMEM across all grid steps.
                pl.BlockSpec((in_size, h_pad), lambda i: (0, 0)),
                pl.BlockSpec((1, h_pad), lambda i: (0, 0)),
                pl.BlockSpec((h_pad, o_pad), lambda i: (0, 0)),
                pl.BlockSpec((1, o_pad), lambda i: (0, 0)),
            ],
            out_specs=pl.BlockSpec((tb, o_pad), lambda i: (i, 0)),
        ),
        compiler_params=pltpu.CompilerParams(
            # Batch axis is independent -> megacore-shardable on v7x.
            dimension_semantics=("parallel",)),
        cost_estimate=pl.CostEstimate(
            flops=flops, transcendentals=0, bytes_accessed=bytes_accessed),
    )(x, w1_t, b1_p, w2_t, b2_p)

    # Slice away batch padding and the padded (zero) output lanes.
    return out_padded[:B, :out_size]


def _ref_forward(x, w1, b1, w2, b2):
    h = jnp.maximum(x @ w1.T + b1, 0.0)
    return h @ w2.T + b2


if __name__ == "__main__":
    # Shapes implied by the module: Linear(input_size, hidden_size) -> ReLU ->
    # Linear(hidden_size, output_size).  batch=256 with block_b=128 gives a
    # 2-step "parallel" grid (exercises batch tiling / megacore path) while
    # staying small.
    batch, input_size, hidden_size, output_size = 256, 32, 64, 16

    key = jax.random.PRNGKey(0)
    kx, kw1, kb1, kw2, kb2 = jax.random.split(key, 5)

    x = jax.random.normal(kx, (batch, input_size), dtype=jnp.float32)
    # Deterministic param init (uniform, roughly matching nn.Linear scaling),
    # in PyTorch (out_features, in_features) layout.
    lim1 = 1.0 / (input_size ** 0.5)
    lim2 = 1.0 / (hidden_size ** 0.5)
    w1 = jax.random.uniform(kw1, (hidden_size, input_size),
                            minval=-lim1, maxval=lim1, dtype=jnp.float32)
    b1 = jax.random.uniform(kb1, (hidden_size,),
                            minval=-lim1, maxval=lim1, dtype=jnp.float32)
    w2 = jax.random.uniform(kw2, (output_size, hidden_size),
                            minval=-lim2, maxval=lim2, dtype=jnp.float32)
    b2 = jax.random.uniform(kb2, (output_size,),
                            minval=-lim2, maxval=lim2, dtype=jnp.float32)

    # One-time prep (transposes / lane padding hoisted out of the hot path).
    params, out_size = prepare_params(w1, b1, w2, b2)

    out = simple_nn_forward(x, params, out_size=out_size, block_b=128)
    out = jax.block_until_ready(out)

    ref = _ref_forward(x, w1, b1, w2, b2)
    assert out.shape == (batch, output_size)
    assert jnp.allclose(out, ref, atol=1e-5, rtol=1e-5), "mismatch vs reference"

    print("KERNEL_OK")
</pallas_src>

<mosaic_0001>
module attributes {stable_mosaic.version = 11 : i64} {
  func.func @_mlp_kernel(%arg0: i32, %arg1: memref<128x32xf32, #tpu.memory_space<vmem>>, %arg2: memref<32x128xf32, #tpu.memory_space<vmem>>, %arg3: memref<1x128xf32, #tpu.memory_space<vmem>>, %arg4: memref<128x128xf32, #tpu.memory_space<vmem>>, %arg5: memref<1x128xf32, #tpu.memory_space<vmem>>, %arg6: memref<128x128xf32, #tpu.memory_space<vmem>>) attributes {dimension_semantics = [#tpu.dimension_semantics<parallel>], iteration_bounds = array<i64: 2>, scalar_prefetch = 0 : i64, scratch_operands = 0 : i64, tpu.core_type = #tpu.core_type<tc>, window_params = [{transform_indices = @transform_0, window_bounds = array<i64: 128, 32>}, {pipeline_mode = #tpu.pipeline_mode<synchronous>, transform_indices = @transform_1, window_bounds = array<i64: 32, 128>}, {pipeline_mode = #tpu.pipeline_mode<synchronous>, transform_indices = @transform_2, window_bounds = array<i64: 1, 128>}, {pipeline_mode = #tpu.pipeline_mode<synchronous>, transform_indices = @transform_3, window_bounds = array<i64: 128, 128>}, {pipeline_mode = #tpu.pipeline_mode<synchronous>, transform_indices = @transform_4, window_bounds = array<i64: 1, 128>}, {transform_indices = @transform_5, window_bounds = array<i64: 128, 128>}]} {
    %c0 = arith.constant 0 : index
    %c0_0 = arith.constant 0 : index
    %0 = vector.load %arg1[%c0, %c0_0] : memref<128x32xf32, #tpu.memory_space<vmem>>, vector<128x32xf32>
    %c0_1 = arith.constant 0 : index
    %c0_2 = arith.constant 0 : index
    %1 = vector.load %arg2[%c0_1, %c0_2] : memref<32x128xf32, #tpu.memory_space<vmem>>, vector<32x128xf32>
    %cst = arith.constant dense<0.000000e+00> : vector<128x128xf32>
    %2 = tpu.matmul %0, %1, %cst {dimension_numbers = #tpu.dot_dimension_numbers<[1], [0], [0], [1], [0, 0, 1, 1], [], []>} : vector<128x32xf32>, vector<32x128xf32>, vector<128x128xf32> -> vector<128x128xf32>
    %c0_3 = arith.constant 0 : index
    %c0_4 = arith.constant 0 : index
    %3 = vector.load %arg3[%c0_3, %c0_4] : memref<1x128xf32, #tpu.memory_space<vmem>>, vector<1x128xf32>
    %4 = vector.broadcast %3 : vector<1x128xf32> to vector<128x128xf32>
    %5 = arith.addf %2, %4 : vector<128x128xf32>
    %cst_5 = arith.constant 0.000000e+00 : f32
    %6 = vector.broadcast %cst_5 : f32 to vector<128x128xf32>
    %7 = arith.maximumf %5, %6 : vector<128x128xf32>
    %c0_6 = arith.constant 0 : index
    %c0_7 = arith.constant 0 : index
    %8 = vector.load %arg4[%c0_6, %c0_7] : memref<128x128xf32, #tpu.memory_space<vmem>>, vector<128x128xf32>
    %cst_8 = arith.constant dense<0.000000e+00> : vector<128x128xf32>
    %9 = tpu.matmul %7, %8, %cst_8 {dimension_numbers = #tpu.dot_dimension_numbers<[1], [0], [0], [1], [0, 0, 1, 1], [], []>} : vector<128x128xf32>, vector<128x128xf32>, vector<128x128xf32> -> vector<128x128xf32>
    %c0_9 = arith.constant 0 : index
    %c0_10 = arith.constant 0 : index
    %10 = vector.load %arg5[%c0_9, %c0_10] : memref<1x128xf32, #tpu.memory_space<vmem>>, vector<1x128xf32>
    %11 = vector.broadcast %10 : vector<1x128xf32> to vector<128x128xf32>
    %12 = arith.addf %9, %11 : vector<128x128xf32>
    %c0_11 = arith.constant 0 : index
    %c0_12 = arith.constant 0 : index
    %13 = vector.load %arg6[%c0_11, %c0_12] : memref<128x128xf32, #tpu.memory_space<vmem>>, vector<128x128xf32>
    tpu.vector_store %arg6[%c0_11, %c0_12], %12 {strides = array<i32>} : memref<128x128xf32, #tpu.memory_space<vmem>>, vector<128x128xf32>,
    return
  }
  func.func @transform_0(%arg0: i32) -> (i32, i32) {
    %c0_i32 = arith.constant 0 : i32
    %c0_i32_0 = arith.constant 0 : i32
    return %arg0, %c0_i32 : i32, i32
  }
  func.func @transform_1(%arg0: i32) -> (i32, i32) {
    %c0_i32 = arith.constant 0 : i32
    %c0_i32_0 = arith.constant 0 : i32
    %c0_i32_1 = arith.constant 0 : i32
    return %c0_i32, %c0_i32_0 : i32, i32
  }
  func.func @transform_2(%arg0: i32) -> (i32, i32) {
    %c0_i32 = arith.constant 0 : i32
    %c0_i32_0 = arith.constant 0 : i32
    %c0_i32_1 = arith.constant 0 : i32
    return %c0_i32, %c0_i32_0 : i32, i32
  }
  func.func @transform_3(%arg0: i32) -> (i32, i32) {
    %c0_i32 = arith.constant 0 : i32
    %c0_i32_0 = arith.constant 0 : i32
    %c0_i32_1 = arith.constant 0 : i32
    return %c0_i32, %c0_i32_0 : i32, i32
  }
  func.func @transform_4(%arg0: i32) -> (i32, i32) {
    %c0_i32 = arith.constant 0 : i32
    %c0_i32_0 = arith.constant 0 : i32
    %c0_i32_1 = arith.constant 0 : i32
    return %c0_i32, %c0_i32_0 : i32, i32
  }
  func.func @transform_5(%arg0: i32) -> (i32, i32) {
    %c0_i32 = arith.constant 0 : i32
    %c0_i32_0 = arith.constant 0 : i32
    return %arg0, %c0_i32 : i32, i32
  }
}

</mosaic_0001>

<bundles_post_ra>
// kernel: simple_nn_forward.1
= control target key start
LH: loop header
LB: loop body
LE: loop exit
PB: predicated region body
PF: predicated region fallthrough
CT: control target
= control target key end

     0   :  { %s976_s18 = smov 0   ;;  %s1118_s0 = inlined_call_operand.vmem [shape: f32[256,32], index: 0, kind: input, shape index: {}]   ;;  %s1119_s1 = inlined_call_operand.vmem [shape: f32[32,128], index: 1, kind: input, shape index: {}]   ;;  %s1120_s2 = inlined_call_operand.vmem [shape: f32[1,128], index: 2, kind: input, shape index: {}]   ;;  %s1121_s3 = inlined_call_operand.vmem [shape: f32[128,128], index: 3, kind: input, shape index: {}]   ;;  %s1122_s4 = inlined_call_operand.vmem [shape: f32[1,128], index: 4, kind: input, shape index: {}]   ;;  %s1123_s5 = inlined_call_operand.vmem [shape: f32[256,128], index: 5, kind: output, shape index: {}]  }
   0x1 LB: > { %s705_s19 = sadd.s32 4294967295, %s944_s18   ;;  %p709_p0 = scmp.ge.s32.totalorder %s944_s18, 1  ;;  %s944_s18 = sphi %s976_s18, %s15_s18  }
   0x2   : > { %p188_p1 = scmp.lt.s32.totalorder %s944_s18, 3 }
   0x4   : > { %p189_p2 = pnand %p709_p0, %p188_p1 }
   0x5   : > { %v244_v0 = vld [vmem:[%s1119_s1] sm:$0xff] (!%p189_p2)  ;;  %v245_v1 = vld [vmem:[%s1119_s1 + $0x8] sm:$0xff] (!%p189_p2)  ;;  %v246_v2 = vld [vmem:[%s1119_s1 + $0x10] sm:$0xff] (!%p189_p2)  ;;  %s710_s26 = sshll.u32 (!%p189_p2), %s705_s19, 4  ;;  %vm255_vm0 = vcmask (!%p189_p2), 261120  }
   0x6   : > { %192 = sbr.rel (%p189_p2) target bundleno = 480 (0x1e0), region = 40  ;;  %v874_v3 = vpack.c.bf16 (!%p189_p2), %v245_v1, %v244_v0  ;;  %v247_v4 = vld [vmem:[%s1119_s1 + $0x18] sm:$0xff] (!%p189_p2)  ;;  %p217_p3 = scmp.lt.s32.totalorder (!%p189_p2), %s710_s26, 31  ;;  %v465_v5 = vld [vmem:[%s1121_s3] sm:$0xff] (!%p189_p2)  ;;  %v466_v6 = vld [vmem:[%s1121_s3 + $0x8] sm:$0xff] (!%p189_p2) }
   0x7   : > { %v878_v7 = vpack.c.bf16 (!%p189_p2), %v247_v4, %v246_v2  ;;  %v882_v8 = vpack.c.bf16 (!%p189_p2), %v466_v6, %v465_v5  ;;  %v467_v9 = vld [vmem:[%s1121_s3 + $0x10] sm:$0xff] (!%p189_p2)  ;;  %v468_v10 = vld [vmem:[%s1121_s3 + $0x18] sm:$0xff] (!%p189_p2)  ;;  %v469_v12 = vld [vmem:[%s1121_s3 + $0x20] sm:$0xff] (!%p189_p2) }
   0x8   : > { %875 = vmatprep.subr.bf16.mxu0 (!%p189_p2), %v874_v3  ;;  %v886_v11 = vpack.c.bf16 (!%p189_p2), %v468_v10, %v467_v9  ;;  %v470_v13 = vld [vmem:[%s1121_s3 + $0x28] sm:$0xff] (!%p189_p2)  ;;  %v471_v18 = vld [vmem:[%s1121_s3 + $0x30] sm:$0xff] (!%p189_p2)  ;;  %v472_v19 = vld [vmem:[%s1121_s3 + $0x38] sm:$0xff] (!%p189_p2) }
   0x9   : > { %877 = vmatpush3.bf16.msra.mxu0 (!%p189_p2), %v874_v3  ;;  %914 = vmatprep.subr.bf16.mxu1 (!%p189_p2), %v882_v8  ;;  %v890_v16 = vpack.c.bf16 (!%p189_p2), %v470_v13, %v469_v12  ;;  %v894_v21 = vpack.c.bf16 (!%p189_p2), %v472_v19, %v471_v18  ;;  %v473_v23 = vld [vmem:[%s1121_s3 + $0x40] sm:$0xff] (!%p189_p2)  ;;  %v474_v24 = vld [vmem:[%s1121_s3 + $0x48] sm:$0xff] (!%p189_p2)  ;;  %v475_v28 = vld [vmem:[%s1121_s3 + $0x50] sm:$0xff] (!%p189_p2) }
   0xa   : > { %879 = vmatprep.subr.bf16.mxu0 (!%p189_p2), %v878_v7  ;;  %922 = vmatpush3.bf16.msra.mxu1 (!%p189_p2), %v882_v8  ;;  %v898_v26 = vpack.c.bf16 (!%p189_p2), %v474_v24, %v473_v23  ;;  %v476_v29 = vld [vmem:[%s1121_s3 + $0x58] sm:$0xff] (!%p189_p2)  ;;  %v477_v33 = vld [vmem:[%s1121_s3 + $0x60] sm:$0xff] (!%p189_p2)  ;;  %v478_v34 = vld [vmem:[%s1121_s3 + $0x68] sm:$0xff] (!%p189_p2) }
   0xb   : > { %915 = vmatprep.subr.bf16.mxu1 (!%p189_p2), %v886_v11  ;;  %v902_v31 = vpack.c.bf16 (!%p189_p2), %v476_v29, %v475_v28  ;;  %v906_v36 = vpack.c.bf16 (!%p189_p2), %v478_v34, %v477_v33  ;;  %v479_v43 = vld [vmem:[%s1121_s3 + $0x70] sm:$0xff] (!%p189_p2)  ;;  %v480_v44 = vld [vmem:[%s1121_s3 + $0x78] sm:$0xff] (!%p189_p2)  ;;  %v714_v46 = vld [vmem:[%s1120_s2] ss:$0 sm:$0xff] (!%p189_p2) }
   0xc   : > { %v910_v45 = vpack.c.bf16 (!%p189_p2), %v480_v44, %v479_v43 }
   0xd   : > { %s1125_s26 = smov (!%p217_p3, %s710_s26), 31  ;;  %881 = vmatpush3.bf16.msra.mxu0 %v878_v7 }
   0xe   : > { %s711_s12 = sshll.u32 %s1125_s26, 3  ;;  %883 = vmatprep.subr.bf16.mxu0 %v882_v8  ;;  %923 = vmatpush3.bf16.msra.mxu1 %v886_v11 }
   0xf   : > { %s1022_s20 = scalar_lea.vmem %s1118_s0, %s711_s12  ;;  %916 = vmatprep.subr.bf16.mxu1 %v890_v16  ;;  %s1097_s25 = scalar_lea.vmem %s1123_s5, %s711_s12 }
  0x10   : > { %v228_v14 = vld [vmem:[%s1022_s20] sm:$0xff]  ;;  %v229_v15 = vld [vmem:[%s1022_s20 + $0x8] sm:$0xff]  ;;  %v230_v17 = vld [vmem:[%s1022_s20 + $0x10] sm:$0xff] }
  0x11   : > { %794 = vmatprep.mubr.msk.f32.mxu0 %vm255_vm0, %v228_v14  ;;  %v231_v20 = vld [vmem:[%s1022_s20 + $0x18] sm:$0xff]  ;;  %v232_v22 = vld [vmem:[%s1022_s20 + $0x20] sm:$0xff]  ;;  %v233_v25 = vld [vmem:[%s1022_s20 + $0x28] sm:$0xff] }
  0x12   : > { %795 = vmatmul.mubr.msk.f32.vlgmr.msra.gmra.mrb[0].mxu0 %vm255_vm0, %v229_v15  ;;  %924 = vmatpush3.bf16.msra.mxu1 %v890_v16  ;;  %v234_v27 = vld [vmem:[%s1022_s20 + $0x30] sm:$0xff]  ;;  %v235_v30 = vld [vmem:[%s1022_s20 + $0x38] sm:$0xff]  ;;  %v236_v32 = vld [vmem:[%s1022_s20 + $0x40] sm:$0xff] }
  0x13   : > { %797 = vmatprep.mubr.msk.f32.mxu0 %vm255_vm0, %v230_v17  ;;  %885 = vmatpush3.bf16.msra.mxu0 %v882_v8  ;;  %v237_v35 = vld [vmem:[%s1022_s20 + $0x48] sm:$0xff]  ;;  %v238_v37 = vld [vmem:[%s1022_s20 + $0x50] sm:$0xff]  ;;  %v239_v38 = vld [vmem:[%s1022_s20 + $0x58] sm:$0xff] }
  0x14   : > { %887 = vmatprep.subr.bf16.mxu0 %v886_v11  ;;  %917 = vmatprep.subr.bf16.mxu1 %v894_v21  ;;  %v240_v39 = vld [vmem:[%s1022_s20 + $0x60] sm:$0xff]  ;;  %v241_v40 = vld [vmem:[%s1022_s20 + $0x68] sm:$0xff]  ;;  %v242_v41 = vld [vmem:[%s1022_s20 + $0x70] sm:$0xff] }
  0x15   : > { %v243_v42 = vld [vmem:[%s1022_s20 + $0x78] sm:$0xff] }
  0x16   : > { %798 = vmatmul.mubr.msk.f32.gmra.mrb[2].mxu0 %vm255_vm0, %v231_v20  ;;  %925 = vmatpush3.bf16.msra.mxu1 %v894_v21 }
  0x17   : > { %800 = vmatprep.mubr.msk.f32.mxu0 %vm255_vm0, %v232_v22  ;;  %889 = vmatpush3.bf16.msra.mxu0 %v886_v11 }
  0x18   : > { %891 = vmatprep.subr.bf16.mxu0 %v890_v16  ;;  %918 = vmatprep.subr.bf16.mxu1 %v898_v26 }
  0x1a   : > { %801 = vmatmul.mubr.msk.f32.gmra.mrb[4].mxu0 %vm255_vm0, %v233_v25  ;;  %926 = vmatpush3.bf16.msra.mxu1 %v898_v26 }
  0x1b   : > { %803 = vmatprep.mubr.msk.f32.mxu0 %vm255_vm0, %v234_v27  ;;  %893 = vmatpush3.bf16.msra.mxu0 %v890_v16 }
  0x1c   : > { %895 = vmatprep.subr.bf16.mxu0 %v894_v21  ;;  %919 = vmatprep.subr.bf16.mxu1 %v902_v31 }
  0x1e   : > { %804 = vmatmul.mubr.msk.f32.gmra.mrb[6].mxu0 %vm255_vm0, %v235_v30  ;;  %927 = vmatpush3.bf16.msra.mxu1 %v902_v31 }
  0x1f   : > { %806 = vmatprep.mubr.msk.f32.mxu0 %vm255_vm0, %v236_v32  ;;  %897 = vmatpush3.bf16.msra.mxu0 %v894_v21 }
  0x20   : > { %899 = vmatprep.subr.bf16.mxu0 %v898_v26  ;;  %920 = vmatprep.subr.bf16.mxu1 %v906_v36 }
  0x22   : > { %807 = vmatmul.mubr.msk.f32.gmra.mrb[8].mxu0 %vm255_vm0, %v237_v35  ;;  %928 = vmatpush3.bf16.msra.mxu1 %v906_v36 }
  0x23   : > { %809 = vmatprep.mubr.msk.f32.mxu0 %vm255_vm0, %v238_v37  ;;  %901 = vmatpush3.bf16.msra.mxu0 %v898_v26 }
  0x24   : > { %903 = vmatprep.subr.bf16.mxu0 %v902_v31  ;;  %921 = vmatprep.subr.bf16.mxu1 %v910_v45 }
  0x26   : > { %810 = vmatmul.mubr.msk.f32.gmra.mrb[10].mxu0 %vm255_vm0, %v239_v38  ;;  %929 = vmatpush3.bf16.msra.mxu1 %v910_v45 }
  0x27   : > { %812 = vmatprep.mubr.msk.f32.mxu0 %vm255_vm0, %v240_v39  ;;  %905 = vmatpush3.bf16.msra.mxu0 %v902_v31  ;;  %v731_v31 = vld [vmem:[%s1122_s4] ss:$0 sm:$0xff] }
  0x28   : > { %907 = vmatprep.subr.bf16.mxu0 %v906_v36 }
  0x2a   : > { %813 = vmatmul.mubr.msk.f32.gmra.mrb[12].mxu0 %vm255_vm0, %v241_v40 }
  0x2b   : > { %815 = vmatprep.mubr.msk.f32.mxu0 %vm255_vm0, %v242_v41  ;;  %909 = vmatpush3.bf16.msra.mxu0 %v906_v36 }
  0x2c   : > { %911 = vmatprep.subr.bf16.mxu0 %v910_v45 }
  0x2e   : > { %816 = vmatmul.mubr.msk.f32.gmra.mrb[14].mxu0 %vm255_vm0, %v243_v42 }
  0x2f   : > { %913 = vmatpush3.bf16.msra.mxu0 %v910_v45 }
  0xe5   : > { %v796_v47 = vpop.f32.mrb[0].mxu0 }
  0xe6   : > { %v376_v48 = vadd.f32 %v796_v47, %v714_v46  ;;  %v370_v49 = vpop.f32.mrb[1].mxu0 }
  0xe7   : > { %v371_v50 = vadd.f32 %v714_v46, %v370_v49 }
  0xe8   : > { %v450_v53 = vmax.f32 %v376_v48, 0.0 }
  0xe9   : > { %v449_v51 = vmax.f32 %v371_v50, 0.0  ;;  %v799_v52 = vpop.f32.mrb[2].mxu0 }
  0xea   : > { %v386_v54 = vadd.f32 %v799_v52, %v714_v46  ;;  %v380_v55 = vpop.f32.mrb[3].mxu0 }
  0xeb   : > { %v381_v56 = vadd.f32 %v714_v46, %v380_v55  ;;  %850 = vmatprep.mubr.f32.mxu0 %v449_v51 }
  0xec   : > { %851 = vmatmul.mubr.f32.vlgmr.msra.gmra.mrb[16].mxu0 %v450_v53  ;;  %v452_v59 = vmax.f32 %v386_v54, 0.0 }
  0xed   : > { %v451_v57 = vmax.f32 %v381_v56, 0.0  ;;  %v802_v58 = vpop.f32.mrb[4].mxu0 }
  0xee   : > { %v396_v60 = vadd.f32 %v802_v58, %v714_v46  ;;  %v390_v61 = vpop.f32.mrb[5].mxu0 }
  0xef   : > { %v391_v62 = vadd.f32 %v714_v46, %v390_v61  ;;  %853 = vmatprep.mubr.f32.mxu0 %v451_v57 }
  0xf0   : > { %854 = vmatmul.mubr.f32.gmra.mrb[18].mxu0 %v452_v59  ;;  %v454_v1 = vmax.f32 %v396_v60, 0.0 }
  0xf1   : > { %v453_v63 = vmax.f32 %v391_v62, 0.0  ;;  %v805_v0 = vpop.f32.mrb[6].mxu0 }
  0xf2   : > { %v406_v2 = vadd.f32 %v805_v0, %v714_v46  ;;  %v400_v3 = vpop.f32.mrb[7].mxu0 }
  0xf3   : > { %856 = vmatprep.mubr.f32.mxu0 %v453_v63  ;;  %v401_v4 = vadd.f32 %v714_v46, %v400_v3 }
  0xf4   : > { %857 = vmatmul.mubr.f32.gmra.mrb[20].mxu0 %v454_v1  ;;  %v456_v7 = vmax.f32 %v406_v2, 0.0 }
  0xf5   : > { %v808_v5 = vpop.f32.mrb[8].mxu0  ;;  %v455_v6 = vmax.f32 %v401_v4, 0.0 }
  0xf6   : > { %v416_v8 = vadd.f32 %v808_v5, %v714_v46  ;;  %v410_v9 = vpop.f32.mrb[9].mxu0 }
  0xf7   : > { %v411_v10 = vadd.f32 %v714_v46, %v410_v9  ;;  %859 = vmatprep.mubr.f32.mxu1 %v455_v6 }
  0xf8   : > { %860 = vmatmul.mubr.f32.vlgmr.msra.gmra.mrb[0].mxu1 %v456_v7  ;;  %v458_v13 = vmax.f32 %v416_v8, 0.0 }
  0xf9   : > { %v457_v11 = vmax.f32 %v411_v10, 0.0  ;;  %v811_v12 = vpop.f32.mrb[10].mxu0 }
  0xfa   : > { %v426_v14 = vadd.f32 %v811_v12, %v714_v46  ;;  %v420_v15 = vpop.f32.mrb[11].mxu0 }
  0xfb   : > { %v421_v16 = vadd.f32 %v714_v46, %v420_v15  ;;  %862 = vmatprep.mubr.f32.mxu1 %v457_v11 }
  0xfc   : > { %863 = vmatmul.mubr.f32.gmra.mrb[2].mxu1 %v458_v13  ;;  %v460_v19 = vmax.f32 %v426_v14, 0.0 }
  0xfd   : > { %v459_v17 = vmax.f32 %v421_v16, 0.0  ;;  %v814_v18 = vpop.f32.mrb[12].mxu0 }
  0xfe   : > { %v436_v20 = vadd.f32 %v814_v18, %v714_v46  ;;  %v430_v21 = vpop.f32.mrb[13].mxu0 }
  0xff   : > { %v431_v22 = vadd.f32 %v714_v46, %v430_v21  ;;  %865 = vmatprep.mubr.f32.mxu1 %v459_v17 }
 0x100   : > { %866 = vmatmul.mubr.f32.gmra.mrb[4].mxu1 %v460_v19  ;;  %v462_v25 = vmax.f32 %v436_v20, 0.0 }
 0x101   : > { %v461_v23 = vmax.f32 %v431_v22, 0.0  ;;  %v817_v24 = vpop.f32.mrb[14].mxu0 }
 0x102   : > { %v446_v26 = vadd.f32 %v817_v24, %v714_v46  ;;  %v440_v27 = vpop.f32.mrb[15].mxu0 }
 0x103   : > { %v441_v28 = vadd.f32 %v714_v46, %v440_v27  ;;  %868 = vmatprep.mubr.f32.mxu1 %v461_v23 }
 0x104   : > { %869 = vmatmul.mubr.f32.gmra.mrb[6].mxu1 %v462_v25  ;;  %v464_v30 = vmax.f32 %v446_v26, 0.0 }
 0x105   : > { %v463_v29 = vmax.f32 %v441_v28, 0.0 }
 0x107   : > { %871 = vmatprep.mubr.f32.mxu1 %v463_v29 }
 0x108   : > { %872 = vmatmul.mubr.f32.gmra.mrb[8].mxu1 %v464_v30 }
 0x1bf   : > { %v852_v32 = vpop.f32.mrb[16].mxu0 }
 0x1c0   : > { %v560_v33 = vadd.f32 %v852_v32, %v731_v31  ;;  %v554_v34 = vpop.f32.mrb[17].mxu0 }
 0x1c1   : > { %v555_v35 = vadd.f32 %v731_v31, %v554_v34 }
 0x1c2   : > { %634 = vst [vmem:[%s1097_s25 + $0x8] sm:$0xff] %v560_v33 }
 0x1c3   : > { %633 = vst [vmem:[%s1097_s25] sm:$0xff] %v555_v35  ;;  %v855_v36 = vpop.f32.mrb[18].mxu0 }
 0x1c4   : > { %v570_v37 = vadd.f32 %v855_v36, %v731_v31  ;;  %v564_v38 = vpop.f32.mrb[19].mxu0 }
 0x1c5   : > { %v565_v39 = vadd.f32 %v731_v31, %v564_v38 }
 0x1c6   : > { %636 = vst [vmem:[%s1097_s25 + $0x18] sm:$0xff] %v570_v37 }
 0x1c7   : > { %635 = vst [vmem:[%s1097_s25 + $0x10] sm:$0xff] %v565_v39  ;;  %v858_v40 = vpop.f32.mrb[20].mxu0 }
 0x1c8   : > { %v580_v41 = vadd.f32 %v858_v40, %v731_v31  ;;  %v574_v42 = vpop.f32.mrb[21].mxu0 }
 0x1c9   : > { %v575_v43 = vadd.f32 %v731_v31, %v574_v42 }
 0x1ca   : > { %638 = vst [vmem:[%s1097_s25 + $0x28] sm:$0xff] %v580_v41 }
 0x1cb   : > { %637 = vst [vmem:[%s1097_s25 + $0x20] sm:$0xff] %v575_v43  ;;  %v861_v44 = vpop.f32.mrb[0].mxu1 }
 0x1cc   : > { %v590_v45 = vadd.f32 %v861_v44, %v731_v31  ;;  %v584_v46 = vpop.f32.mrb[1].mxu1 }
 0x1cd   : > { %v585_v47 = vadd.f32 %v731_v31, %v584_v46 }
 0x1ce   : > { %640 = vst [vmem:[%s1097_s25 + $0x38] sm:$0xff] %v590_v45 }
 0x1cf   : > { %639 = vst [vmem:[%s1097_s25 + $0x30] sm:$0xff] %v585_v47  ;;  %v864_v48 = vpop.f32.mrb[2].mxu1 }
 0x1d0   : > { %v600_v49 = vadd.f32 %v864_v48, %v731_v31  ;;  %v594_v50 = vpop.f32.mrb[3].mxu1 }
 0x1d1   : > { %v595_v51 = vadd.f32 %v731_v31, %v594_v50 }
 0x1d2   : > { %642 = vst [vmem:[%s1097_s25 + $0x48] sm:$0xff] %v600_v49 }
 0x1d3   : > { %641 = vst [vmem:[%s1097_s25 + $0x40] sm:$0xff] %v595_v51  ;;  %v867_v52 = vpop.f32.mrb[4].mxu1 }
 0x1d4   : > { %v610_v53 = vadd.f32 %v867_v52, %v731_v31  ;;  %v604_v54 = vpop.f32.mrb[5].mxu1 }
 0x1d5   : > { %v605_v55 = vadd.f32 %v731_v31, %v604_v54 }
 0x1d6   : > { %644 = vst [vmem:[%s1097_s25 + $0x58] sm:$0xff] %v610_v53 }
 0x1d7   : > { %643 = vst [vmem:[%s1097_s25 + $0x50] sm:$0xff] %v605_v55  ;;  %v870_v56 = vpop.f32.mrb[6].mxu1 }
 0x1d8   : > { %v620_v57 = vadd.f32 %v870_v56, %v731_v31  ;;  %v614_v58 = vpop.f32.mrb[7].mxu1 }
 0x1d9   : > { %v615_v59 = vadd.f32 %v731_v31, %v614_v58 }
 0x1da   : > { %646 = vst [vmem:[%s1097_s25 + $0x68] sm:$0xff] %v620_v57 }
 0x1db   : > { %645 = vst [vmem:[%s1097_s25 + $0x60] sm:$0xff] %v615_v59  ;;  %v873_v60 = vpop.f32.mrb[8].mxu1 }
 0x1dc   : > { %v630_v61 = vadd.f32 %v873_v60, %v731_v31  ;;  %v624_v62 = vpop.f32.mrb[9].mxu1 }
 0x1dd   : > { %v625_v63 = vadd.f32 %v731_v31, %v624_v62 }
 0x1de   : > { %648 = vst [vmem:[%s1097_s25 + $0x78] sm:$0xff] %v630_v61 }
 0x1df   : > { %647 = vst [vmem:[%s1097_s25 + $0x70] sm:$0xff] %v625_v63 }
 0x1e0 PF: > { %s15_s18 = sadd.s32 1, %s944_s18  }
 0x1e1   : > { %p12_p4 = scmp.ge.s32.totalorder %s15_s18, 4  }
 0x1e3   :  { %14 = sbr.rel (!%p12_p4) target bundleno = 1 (0x1), region = 70 }

</bundles_post_ra>
